<compile_context>
chip_gen: v7x
topology: tpu7x:2x2x1
jax: 0.10.0
libtpu: 0.0.40
codegen_flags: <defaults>
</compile_context>

<pallas_src>
import jax
import jax.numpy as jnp
from jax.experimental import pallas as pl
from jax.experimental.pallas import tpu as pltpu


def _dist_kernel(u_ref, w_ref, n2_ref, o_ref):
    # u_ref : (Dp, L) bf16  -- unfolded patches (feature-major) for one batch element
    # w_ref : (P, Dp) bf16  -- dictionary patches, pre-scaled by -2, zero-padded along D
    # n2_ref: (P, 1)  f32   -- precomputed ||w_p||^2 (module's norm2_patches)
    # o_ref : (P, L)  f32
    u = u_ref[...]                                                  # bf16
    uf = u.astype(jnp.float32)
    sq = jnp.sum(uf * uf, axis=0, keepdims=True)                    # (1, L)  ||u_l||^2, f32
    dot = jnp.dot(w_ref[...], u,                                    # (P, L) = -2 * W @ u
                  preferred_element_type=jnp.float32)               # MXU, f32 accumulate
    o_ref[...] = jnp.maximum(sq + dot + n2_ref[...], 0.0)           # relu, f32 epilogue


def spatial_net_forward(x, conv_weight, conv_size, padding=4, stride=1):
    """x: (B, C, H, W) f32 (NCHW, like PyTorch). conv_weight: (P, C*k*k) f32.
    Returns dist: (B, P, n, n) f32, identical to the PyTorch module output."""
    B, C, H, W = x.shape
    k = conv_size
    n_h = (H + 2 * padding - k) // stride + 1
    n_w = (W + 2 * padding - k) // stride + 1
    assert n_h == n_w, "module assumes square patch grid"
    n = n_h
    L = n * n
    D = C * k * k
    P = conv_weight.shape[0]
    assert conv_weight.shape[1] == D

    # --- im2col (F.unfold, channel-major feature ordering) as a single XLA op, in bf16 ---
    # TODO(synk): for large images, fuse the unfold into the kernel (k*k shifted-slice
    # accumulation over an "arbitrary" grid axis) so the k^2-inflated patch tensor never
    # hits HBM, and add an L-tiling grid axis sized against per-generation VMEM budgets.
    patches = jax.lax.conv_general_dilated_patches(
        x.astype(jnp.bfloat16), filter_shape=(k, k),
        window_strides=(stride, stride),
        padding=((padding, padding), (padding, padding)))            # (B, D, n, n) bf16
    u = patches.reshape(B, D, L)                                     # (B, D, L), feature-major

    # zero-pad the feature dim to a tile-friendly multiple (zeros change neither dot nor norms)
    Dp = ((D + 127) // 128) * 128
    u_p = jnp.pad(u, ((0, 0), (0, Dp - D), (0, 0)))                  # (B, Dp, L) bf16
    w_p = jnp.pad(-2.0 * conv_weight, ((0, 0), (0, Dp - D)))         # fold the -2 (exact in fp)
    w_p = w_p.astype(jnp.bfloat16)                                   # (P, Dp) bf16
    n2 = jnp.sum(conv_weight.astype(jnp.float32) ** 2, axis=1)[:, None]   # (P, 1) f32

    out = pl.pallas_call(
        _dist_kernel,
        out_shape=jax.ShapeDtypeStruct((B, P, L), jnp.float32),
        grid_spec=pltpu.PrefetchScalarGridSpec(
            num_scalar_prefetch=0,
            grid=(B,),
            in_specs=[
                pl.BlockSpec((pl.Squeezed(), Dp, L), lambda b: (b, 0, 0)),
                pl.BlockSpec((P, Dp), lambda b: (0, 0)),
                pl.BlockSpec((P, 1), lambda b: (0, 0)),
            ],
            out_specs=pl.BlockSpec((pl.Squeezed(), P, L), lambda b: (b, 0, 0)),
        ),
        compiler_params=pltpu.CompilerParams(
            dimension_semantics=("parallel",)),
    )(u_p, w_p, n2)

    return out.reshape(B, P, n, n)                                   # NCHW, free reshape


if __name__ == "__main__":
    # small, deterministic shapes consistent with the module:
    # conv_size=9 with padding=4 / stride=1 keeps the 16x16 spatial grid.
    B, C, H, W = 2, 4, 16, 16
    k = 9
    P = 128                      # number of dictionary patches (out channels)
    D = C * k * k                # 324

    key = jax.random.PRNGKey(0)
    kx, kw = jax.random.split(key)
    x = jax.random.normal(kx, (B, C, H, W), dtype=jnp.float32)
    conv_weight = 0.1 * jax.random.normal(kw, (P, D), dtype=jnp.float32)

    dist = spatial_net_forward(x, conv_weight, conv_size=k)
    dist = jax.block_until_ready(dist)
    assert dist.shape == (B, P, 16, 16), dist.shape

    # pure-JAX f32 reference (explicit F.unfold-ordered im2col) for a sanity check
    xp = jnp.pad(x, ((0, 0), (0, 0), (4, 4), (4, 4)))
    cols = []
    for ki in range(k):
        for kj in range(k):
            cols.append(xp[:, :, ki:ki + 16, kj:kj + 16])
    u = jnp.stack(cols, axis=2).reshape(B, D, 16, 16)
    u = jnp.transpose(u, (0, 2, 3, 1)).reshape(B, 16 * 16, D)
    ref = (jnp.sum(u * u, axis=-1, keepdims=True)
           - 2.0 * jnp.einsum("bld,pd->blp", u, conv_weight,
                              precision=jax.lax.Precision.HIGHEST)
           + jnp.sum(conv_weight ** 2, axis=1)[None, None, :])
    ref = jnp.maximum(ref, 0.0).reshape(B, 16, 16, P).transpose(0, 3, 1, 2)
    err = float(jnp.max(jnp.abs(dist - ref)))
    assert jnp.allclose(dist, ref, rtol=1e-2, atol=1e-2), err

    print("KERNEL_OK")
</pallas_src>

<mosaic_0001>
module attributes {stable_mosaic.version = 11 : i64} {
  func.func @_dist_kernel(%arg0: i32, %arg1: memref<1x384x256xbf16, #tpu.memory_space<vmem>>, %arg2: memref<128x384xbf16, #tpu.memory_space<vmem>>, %arg3: memref<128x1xf32, #tpu.memory_space<vmem>>, %arg4: memref<1x128x256xf32, #tpu.memory_space<vmem>>) attributes {dimension_semantics = [#tpu.dimension_semantics<parallel>], iteration_bounds = array<i64: 2>, scalar_prefetch = 0 : i64, scratch_operands = 0 : i64, tpu.core_type = #tpu.core_type<tc>, window_params = [{transform_indices = @transform_0, window_bounds = array<i64: 1, 384, 256>}, {pipeline_mode = #tpu.pipeline_mode<synchronous>, transform_indices = @transform_1, window_bounds = array<i64: 128, 384>}, {pipeline_mode = #tpu.pipeline_mode<synchronous>, transform_indices = @transform_2, window_bounds = array<i64: 128, 1>}, {transform_indices = @transform_3, window_bounds = array<i64: 1, 128, 256>}]} {
    %c0 = arith.constant 0 : index
    %c0_0 = arith.constant 0 : index
    %c0_1 = arith.constant 0 : index
    %0 = vector.load %arg1[%c0, %c0_0, %c0_1] : memref<1x384x256xbf16, #tpu.memory_space<vmem>>, vector<1x384x256xbf16>
    %1 = vector.shape_cast %0 : vector<1x384x256xbf16> to vector<384x256xbf16>
    %2 = arith.extf %1 : vector<384x256xbf16> to vector<384x256xf32>
    %3 = arith.mulf %2, %2 : vector<384x256xf32>
    %cst = arith.constant dense<0.000000e+00> : vector<256xf32>
    %4 = vector.multi_reduction <add>, %3, %cst [0] : vector<384x256xf32> to vector<256xf32>
    %5 = vector.shape_cast %4 : vector<256xf32> to vector<1x256xf32>
    %c0_2 = arith.constant 0 : index
    %c0_3 = arith.constant 0 : index
    %6 = vector.load %arg2[%c0_2, %c0_3] : memref<128x384xbf16, #tpu.memory_space<vmem>>, vector<128x384xbf16>
    %cst_4 = arith.constant dense<0.000000e+00> : vector<128x256xf32>
    %7 = tpu.matmul %6, %1, %cst_4 {dimension_numbers = #tpu.dot_dimension_numbers<[1], [0], [0], [1], [0, 0, 1, 1], [], []>} : vector<128x384xbf16>, vector<384x256xbf16>, vector<128x256xf32> -> vector<128x256xf32>
    %8 = vector.broadcast %5 : vector<1x256xf32> to vector<128x256xf32>
    %9 = arith.addf %8, %7 : vector<128x256xf32>
    %c0_5 = arith.constant 0 : index
    %c0_6 = arith.constant 0 : index
    %10 = vector.load %arg3[%c0_5, %c0_6] : memref<128x1xf32, #tpu.memory_space<vmem>>, vector<128x1xf32>
    %11 = vector.broadcast %10 : vector<128x1xf32> to vector<128x256xf32>
    %12 = arith.addf %9, %11 : vector<128x256xf32>
    %cst_7 = arith.constant 0.000000e+00 : f32
    %13 = vector.broadcast %cst_7 : f32 to vector<128x256xf32>
    %14 = arith.maximumf %12, %13 : vector<128x256xf32>
    %c0_8 = arith.constant 0 : index
    %c0_9 = arith.constant 0 : index
    %c0_10 = arith.constant 0 : index
    %15 = vector.load %arg4[%c0_8, %c0_9, %c0_10] : memref<1x128x256xf32, #tpu.memory_space<vmem>>, vector<1x128x256xf32>
    %16 = vector.shape_cast %15 : vector<1x128x256xf32> to vector<128x256xf32>
    %17 = vector.shape_cast %14 : vector<128x256xf32> to vector<1x128x256xf32>
    tpu.vector_store %arg4[%c0_8, %c0_9, %c0_10], %17 {strides = array<i32>} : memref<1x128x256xf32, #tpu.memory_space<vmem>>, vector<1x128x256xf32>,
    return
  }
  func.func @transform_0(%arg0: i32) -> (i32, i32, i32) {
    %c0_i32 = arith.constant 0 : i32
    %c0_i32_0 = arith.constant 0 : i32
    %c0_i32_1 = arith.constant 0 : i32
    return %arg0, %c0_i32, %c0_i32_0 : i32, i32, i32
  }
  func.func @transform_1(%arg0: i32) -> (i32, i32) {
    %c0_i32 = arith.constant 0 : i32
    %c0_i32_0 = arith.constant 0 : i32
    %c0_i32_1 = arith.constant 0 : i32
    return %c0_i32, %c0_i32_0 : i32, i32
  }
  func.func @transform_2(%arg0: i32) -> (i32, i32) {
    %c0_i32 = arith.constant 0 : i32
    %c0_i32_0 = arith.constant 0 : i32
    %c0_i32_1 = arith.constant 0 : i32
    return %c0_i32, %c0_i32_0 : i32, i32
  }
  func.func @transform_3(%arg0: i32) -> (i32, i32, i32) {
    %c0_i32 = arith.constant 0 : i32
    %c0_i32_0 = arith.constant 0 : i32
    %c0_i32_1 = arith.constant 0 : i32
    return %arg0, %c0_i32, %c0_i32_0 : i32, i32, i32
  }
}

</mosaic_0001>

<bundles_post_ra>
// kernel: tpu_custom_call.1
= control target key start
LH: loop header
LB: loop body
LE: loop exit
PB: predicated region body
PF: predicated region fallthrough
CT: control target
= control target key end

     0   :  { %8 = vsyncpa [#allocation3], 0  ;;  %s2461_s0 = inlined_call_operand.hbm [shape: bf16[2,384,256], index: 0, kind: input, shape index: {}]   ;;  %s2462_s1 = inlined_call_operand.hbm [shape: bf16[128,384], index: 1, kind: input, shape index: {}]   ;;  %s2463_s2 = inlined_call_operand.vmem [shape: f32[128,1], index: 2, kind: input, shape index: {}]   ;;  %s2464_s3 = inlined_call_operand.hbm [shape: f32[2,128,256], index: 3, kind: output, shape index: {}]  }
   0x1   :  { %10 = vsyncpa [#allocation3 + $0x1], 0 }
   0x2   :  { %11 = vsyncpa [#allocation6], 0 }
   0x3   :  { %12 = vsyncpa [#allocation4], 0 }
   0x4   :  { %14 = vsyncpa [#allocation4 + $0x1], 0  ;;  %s1990_s12 = smov 0   ;;  %s1992_s13 = smov 0  }
   0x5   :  { %s1994_s14 = smov 0   ;;  %s1996_s15 = smov 0  }
   0x6 LB: > { %s2011_s16 = sadd.s32 4294967295, %s1957_s15   ;;  %s1498_s17 = sadd.s32 4294967294, %s1957_s15   ;;  %s1957_s15 = sphi %s1996_s15, %s2484_s15   ;;  %s1953_s14 = sphi %s1994_s14, %s2483_s14   ;;  %s1949_s13 = sphi %s1992_s13, %s2482_s13   ;;  %s1945_s12 = sphi %s1990_s12, %s2481_s12  }
   0x7   : > { %p40_p0 = scmp.ne.s32.totalorder %s1949_s13, %s1945_s12  ;;  %p2465_p1 = scmp.eq.s32.totalorder %s2011_s16, 0 }
   0x8   : > { %p112_p3 = scmp.eq.s32.totalorder %s1498_s17, 1  ;;  %p1499_p5 = scmp.ge.s32.totalorder %s1957_s15, 1 }
   0x9   : > { %p2020_p4 = por %p2465_p1, %p40_p0  ;;  %p119_p7 = scmp.lt.s32.totalorder %s1957_s15, 3 }
   0xa   : > { %p2025_p6 = por %p112_p3, %p40_p0  ;;  %s1959_s21 = smov [#allocation5]  }
   0xb   : > { %s2468_s18 = scalar_select %p2020_p4, 1, 0 }
   0xc   : > { %s2469_s19 = scalar_select %p2025_p6, 1, 0 }
   0xd   : > { %p2030_p8 = pnand %p1499_p5, %p119_p7  ;;  %s131_s22 = sshll.u32 %s1959_s21, 4  ;;  %s2034_s22 = int_to_ptr.vmem [resolvable:$true] %s131_s22 }
   0xe   : > { %s2046_s24 = sadd.s32 1, %s1957_s15   ;;  %s27_s25 = sadd.s32 1, %s1953_s14 }
   0xf   : > { %s2470_s20 = scalar_select %p2030_p8, 1, 0 }
  0x10   : > { %p1627_p9 = pneg %p2030_p8  ;;  %s24_s26 = ssub.s32 %s1957_s15, %s2046_s24 }
  0x11   : > { %s1765_s29 = scalar_lea.hbm %s2462_s1, 3072 }
  0x12   : > { %p2041_p11 = pnand %p1627_p9, %p2465_p1  ;;  %p1766_p12 = scmp.ne.s32.totalorder %s2462_s1, %s1765_s29 }
  0x13   : > { %p1772_p5 = scmp.lt.u32.totalorder %s1765_s29, %s2462_s1 }
  0x14   : > { %p1767_p13 = pneg %p2041_p11 }
  0x16   : > { %p1768_p0 = pnand %p1767_p13, %p1766_p12 }
  0x18   : > { %p1769_p3 = pneg %p1768_p0 }
  0x1a   : > { %p1774_p7 = pnand %p1772_p5, %p1769_p3 }
  0x1c   : > { %1777 = shalt.err (!%p1774_p7)
}
  0x1d   : > { %s1778_s7 = scalar_lea.vmem %s2034_s22, 3072  ;;  %p1786_p2 = scmp.lt.s32.totalorder %s2034_s22, %s2034_s22 }
  0x1e   : > { %p1779_p9 = scmp.ne.s32.totalorder %s2034_s22, %s1778_s7  ;;  %p1787_p6 = scmp.lt.s32.totalorder %s1778_s7, %s1778_s7 }
  0x20   : > { %p1781_p10 = pnand %p1779_p9, %p1767_p13  ;;  %p1788_p4 = por %p1787_p6, %p1786_p2 }
  0x22   : > { %p1782_p1 = pneg %p1781_p10 }
  0x24   : > { %p1789_p8 = pnand %p1788_p4, %p1782_p1 }
  0x26   : > { %1792 = shalt.err (!%p1789_p8)
}
  0x27   : > { %s1960_s8 = smov 192   ;;  %s1961_s9 = smov 12  }
  0x28   : > { %1630 = dma.hbm_to_vmem [thread:$0]  (!%p2041_p11), %s2462_s1, 3072, %s2034_s22, [#allocation6], %s1960_s8, %s1960_s8, %s1961_s9  }
  0x29   : > { %p25_p2 = scmp.eq.s32.totalorder %s24_s26, 0  ;;  %p34_p1 = scmp.ne.s32.totalorder %s1953_s14, %s1949_s13 }
  0x2a   : > { %p35_p4 = scmp.eq.s32.totalorder %s1957_s15, 0  ;;  %p1640_p6 = scmp.lt.s32.totalorder %s1957_s15, 2 }
  0x2b   : > { %s2077_s17 = scalar_select %p25_p2, %s1953_s14, %s27_s25  }
  0x2c   : > { %p36_p8 = por %p35_p4, %p34_p1  ;;  %p2472_p10 = scmp.eq.s32.totalorder %s2011_s16, 1 }
  0x2d   : > { %s148_s27 = sand.u32 1, %s1953_s14   ;;  %s1617_s28 = smul.u32 6144, %s1957_s15 }
  0x2e   : > { %p2081_p12 = por %p2472_p10, %p34_p1  ;;  %s1616_s29 = smul.u32 384, %s148_s27 }
  0x2f   : > { %s2090_s4 = scalar_lea.hbm %s2461_s0, %s1617_s28  ;;  %p2092_p11 = pnand %p1640_p6, %p36_p8 }
  0x30   : > { %s152_s25 = scalar_lea.vmem [#allocation2], %s1616_s29  ;;  %s2098_s5 = scalar_lea.sflag [#allocation3], %s148_s27 }
  0x31   : > { %s159_s26 = sshll.u32 %s152_s25, 4  ;;  %s1793_s6 = scalar_lea.hbm %s2090_s4, 6144  ;;  %s2096_s26 = int_to_ptr.vmem [resolvable:$true] %s159_s26 }
  0x32   : > { %p1794_p13 = scmp.ne.s32.totalorder %s2090_s4, %s1793_s6  ;;  %p1795_p0 = pneg %p2092_p11 }
  0x33   : > { %s1798_s9 = scalar_lea.hbm %s2461_s0, 12288  ;;  %p1799_p7 = scmp.lt.u32.totalorder %s2090_s4, %s2461_s0 }
  0x34   : > { %p1796_p3 = pnand %p1795_p0, %p1794_p13  ;;  %p1800_p9 = scmp.lt.u32.totalorder %s1798_s9, %s1793_s6 }
  0x35   : > { %p1802_p1 = scmp.lt.u32.totalorder %s1793_s6, %s2090_s4 }
  0x36   : > { %p1797_p5 = pneg %p1796_p3  ;;  %p1801_p2 = por %p1800_p9, %p1799_p7 }
  0x38   : > { %p1803_p4 = por %p1802_p1, %p1801_p2 }
  0x3a   : > { %p1804_p6 = pnand %p1803_p4, %p1797_p5 }
  0x3c   : > { %1807 = shalt.err (!%p1804_p6)
}
  0x3d   : > { %s1808_s27 = scalar_lea.vmem %s2096_s26, 6144  ;;  %s1962_s28 = smov [#allocation2]  }
  0x3e   : > { %p1809_p8 = scmp.ne.s32.totalorder %s2096_s26, %s1808_s27  ;;  %s1813_s29 = sshll.u32 %s1962_s28, 4  ;;  %s1814_s29 = int_to_ptr.vmem [resolvable:$false] %s1813_s29 }
  0x3f   : > { %s1815_s23 = scalar_lea.vmem %s1814_s29, 12288  ;;  %p1816_p3 = scmp.lt.s32.totalorder %s2096_s26, %s1814_s29 }
  0x40   : > { %p1811_p10 = pnand %p1809_p8, %p1795_p0  ;;  %p1817_p7 = scmp.lt.s32.totalorder %s1815_s23, %s1808_s27 }
  0x42   : > { %p1812_p13 = pneg %p1811_p10  ;;  %p1818_p9 = por %p1817_p7, %p1816_p3 }
  0x44   : > { %p1819_p2 = pnand %p1818_p9, %p1812_p13 }
  0x46   : > { %1822 = shalt.err (!%p1819_p2)
}
  0x47   : > { %s1963_s30 = smov 128   ;;  %s1964_s25 = smov 8  }
  0x48   : > { %1634 = dma.hbm_to_vmem [thread:$0]  (!%p2092_p11), %s2090_s4, 6144, %s2096_s26, %s2098_s5, %s1963_s30, %s1963_s30, %s1964_s25  }
  0x49   : > { %p2475_p0 = scmp.ne.s32.totalorder %s2470_s20, 0 }
  0x4a   : > { %s2129_s6 = sand.u32 (!%p2475_p0), 1, %s1949_s13   ;;  %p2476_p5 = scmp.ne.s32.totalorder (!%p2475_p0), %s2468_s18, 0 }
  0x4b   : > { %171 = sbr.rel (%p2475_p0) target bundleno = 447 (0x1bf), region = 32  ;;  %s174_s8 = scalar_lea.sflag (!%p2475_p0), [#allocation3], %s2129_s6 }
  0x4c   : > { %s1618_s7 = smul.u32 (!%p2475_p0), 384, %s2129_s6 }
  0x4e   : > { %s2133_s9 = scalar_lea.vmem (!%p2475_p0), [#allocation2], %s1618_s7 }
  0x52   : > { %1868 = dma.done.wait (%p2476_p5), %s174_s8, 6144  }
  0x53   : > { %1870 = vsyncadd (%p2476_p5), %s174_s8, 4294961152  ;;  %p2477_p11 = scmp.eq.s32.totalorder %s2011_s16, 0 }
  0x55   : > { %1872 = dma.done.wait (%p2477_p11), [#allocation6], 3072   ;;  %p2478_p1 = pmov %p2477_p11 }
  0x56   : > { %v1965_v0 = vmov 0   ;;  %v205_v1 = vld [vmem:[%s2133_s9] sm:$0xff]  ;;  %v206_v2 = vld [vmem:[%s2133_s9 + $0x8] sm:$0xff]  ;;  %v207_v3 = vld [vmem:[%s2133_s9 + $0x10] sm:$0xff]  ;;  %s1583_s20 = sshll.u32 %s2011_s16, 12  ;;  %s1402_s16 = scalar_lea.sflag [#allocation4], %s2129_s6 }
  0x57   : > { %1874 = vsyncadd (%p2478_p1), [#allocation6], 4294964224  ;;  %1096 = vmatprep.mubr.bf16.mxu0 %v1965_v0  ;;  %1683 = vset.pattern.permute.xlu0 %v1965_v0  ;;  %v1531_v4 = vcombine.high %v205_v1, %v206_v2  ;;  %v1530_v5 = vcombine.low %v205_v1, %v206_v2  ;;  %v208_v6 = vld [vmem:[%s2133_s9 + $0x18] sm:$0xff]  ;;  %1879 = vmul.bf16.f32.vacc0 %v205_v1, %v205_v1  ;;  %v209_v9 = vld [vmem:[%s2133_s9 + $0x20] sm:$0xff]  ;;  %s2412_s5 = scalar_lea.hbm %s2464_s3, %s1583_s20  ;;  %s1967_s11 = smov [#allocation7]  }
  0x58   : > { %1684 = vset.pattern.permute.xlu1 %v1965_v0  ;;  %1880 = vmac.bf16.f32.vacc0 %v206_v2, %v206_v2  ;;  %v1533_v7 = vcombine.high %v207_v3, %v208_v6  ;;  %v1532_v8 = vcombine.low %v207_v3, %v208_v6  ;;  %v210_v10 = vld [vmem:[%s2133_s9 + $0x28] sm:$0xff]  ;;  %v211_v13 = vld [vmem:[%s2133_s9 + $0x30] sm:$0xff]  ;;  %v212_v14 = vld [vmem:[%s2133_s9 + $0x38] sm:$0xff]  ;;  %s1827_s27 = sshll.u32 %s1967_s11, 4  ;;  %s1828_s27 = int_to_ptr.vmem [resolvable:$false] %s1827_s27 }
  0x59   : > { %951 = vmatprep.subr.bf16.mxu1 %v1531_v4  ;;  %1881 = vmac.bf16.f32.vacc0 %v207_v3, %v207_v3  ;;  %v1535_v11 = vcombine.high %v209_v9, %v210_v10  ;;  %v1534_v12 = vcombine.low %v209_v9, %v210_v10  ;;  %v1537_v15 = vcombine.high %v211_v13, %v212_v14  ;;  %v213_v17 = vld [vmem:[%s2133_s9 + $0x40] sm:$0xff]  ;;  %v214_v18 = vld [vmem:[%s2133_s9 + $0x48] sm:$0xff]  ;;  %v215_v21 = vld [vmem:[%s2133_s9 + $0x50] sm:$0xff]  ;;  %s1829_s28 = scalar_lea.vmem %s1828_s27, 8192 }
  0x5a   : > { %952 = vmatpush1.bf16.msra.mxu1 %v1530_v5  ;;  %1882 = vmac.bf16.f32.vacc0 %v208_v6, %v208_v6  ;;  %v1536_v16 = vcombine.low %v211_v13, %v212_v14  ;;  %v1539_v19 = vcombine.high %v213_v17, %v214_v18  ;;  %v1538_v20 = vcombine.low %v213_v17, %v214_v18  ;;  %v216_v22 = vld [vmem:[%s2133_s9 + $0x58] sm:$0xff]  ;;  %v217_v23 = vld [vmem:[%s2133_s9 + $0x60] sm:$0xff]  ;;  %v218_v27 = vld [vmem:[%s2133_s9 + $0x68] sm:$0xff] }
  0x5b   : > { %953 = vmatprep.subr.bf16.mxu1 %v1533_v7  ;;  %1883 = vmac.bf16.f32.vacc0 %v209_v9, %v209_v9  ;;  %v1541_v24 = vcombine.high %v215_v21, %v216_v22  ;;  %v1736_v25 = vld [vmem:[#allocation5 + $0x4] ss:$12 sps:$4 sm:$0xff]   ;;  %v1540_v26 = vcombine.low %v215_v21, %v216_v22  ;;  %v1543_v28 = vcombine.high %v217_v23, %v218_v27  ;;  %v220_v30 = vld [vmem:[%s2133_s9 + $0x78] sm:$0xff]  ;;  %v2166_v33 = vld [vmem:[%s2133_s9 + $0x108] sm:$0xff] }
  0x5c   : > { %1884 = vmac.bf16.f32.vacc0 %v210_v10, %v210_v10  ;;  %983 = vmatprep.mubr.bf16.mxu1 %v1736_v25  ;;  %v219_v29 = vld [vmem:[%s2133_s9 + $0x70] sm:$0xff]  ;;  %v1542_v31 = vcombine.low %v217_v23, %v218_v27  ;;  %v2163_v32 = vld [vmem:[%s2133_s9 + $0x100] sm:$0xff]  ;;  %v222_v39 = vld [vmem:[%s2133_s9 + $0x88] sm:$0xff] }
  0x5d   : > { %1885 = vmac.bf16.f32.vacc0 %v211_v13, %v211_v13  ;;  %v1545_v34 = vcombine.high %v219_v29, %v220_v30  ;;  %v221_v35 = vld [vmem:[%s2133_s9 + $0x80] sm:$0xff]  ;;  %v1544_v36 = vcombine.low %v219_v29, %v220_v30  ;;  %v1563_v37 = vcombine.high %v2163_v32, %v2166_v33  ;;  %v2175_v40 = vld [vmem:[%s2133_s9 + $0x110] sm:$0xff]  ;;  %v2178_v42 = vld [vmem:[%s2133_s9 + $0x118] sm:$0xff] }
  0x5e   : > { %954 = vmatpush1.bf16.msra.mxu1 %v1532_v8  ;;  %1886 = vmac.bf16.f32.vacc0 %v212_v14, %v212_v14  ;;  %v1562_v38 = vcombine.low %v2163_v32, %v2166_v33  ;;  %v1547_v41 = vcombine.high %v221_v35, %v222_v39  ;;  %v1546_v43 = vcombine.low %v221_v35, %v222_v39  ;;  %v1209_v46 = vld [vmem:[%s2463_s2] sm:$0xff]  ;;  %v223_v47 = vld [vmem:[%s2133_s9 + $0x90] sm:$0xff]  ;;  %v224_v48 = vld [vmem:[%s2133_s9 + $0x98] sm:$0xff] }
  0x5f   : > { %955 = vmatprep.subr.bf16.mxu1 %v1535_v11  ;;  %1887 = vmac.bf16.f32.vacc0 %v213_v17, %v213_v17  ;;  %1064 = vmatprep.subr.bf16.mxu0 %v1563_v37  ;;  %v1565_v44 = vcombine.high %v2175_v40, %v2178_v42  ;;  %v1564_v45 = vcombine.low %v2175_v40, %v2178_v42  ;;  %v1211_v49 = vld [vmem:[%s2463_s2 + $0x10] sm:$0xff]  ;;  %v1210_v50 = vld [vmem:[%s2463_s2 + $0x8] sm:$0xff]  ;;  %v1212_v51 = vld [vmem:[%s2463_s2 + $0x18] sm:$0xff] }
  0x60   : > { %1888 = vmac.bf16.f32.vacc0 %v214_v18, %v214_v18  ;;  %1065 = vmatpush1.bf16.msra.mxu0 %v1562_v38  ;;  %1227 = vperm.xlu0 %1683, %v1209_v46   ;;  %v1549_v52 = vcombine.high %v223_v47, %v224_v48  ;;  %v1548_v53 = vcombine.low %v223_v47, %v224_v48  ;;  %v2199_v54 = vld [vmem:[%s2133_s9 + $0x120] sm:$0xff]  ;;  %v2202_v55 = vld [vmem:[%s2133_s9 + $0x128] sm:$0xff]  ;;  %v2217_v1 = vld [vmem:[%s2133_s9 + $0x130] sm:$0xff] }
  0x61   : > { %1889 = vmac.bf16.f32.vacc0 %v215_v21, %v215_v21  ;;  %1066 = vmatprep.subr.bf16.mxu0 %v1565_v44  ;;  %1237 = vperm.xlu1 %1684, %v1211_v49   ;;  %v1213_v56 = vld [vmem:[%s2463_s2 + $0x20] sm:$0xff]  ;;  %v1567_v57 = vcombine.high %v2199_v54, %v2202_v55  ;;  %v1566_v58 = vcombine.low %v2199_v54, %v2202_v55  ;;  %v226_v60 = vld [vmem:[%s2133_s9 + $0xa8] sm:$0xff]  ;;  %v2220_v2 = vld [vmem:[%s2133_s9 + $0x138] sm:$0xff] }
  0x62   : > { %956 = vmatpush1.bf16.msra.mxu1 %v1534_v12  ;;  %1890 = vmac.bf16.f32.vacc0 %v216_v22, %v216_v22  ;;  %v225_v59 = vld [vmem:[%s2133_s9 + $0xa0] sm:$0xff]  ;;  %v1214_v61 = vld [vmem:[%s2463_s2 + $0x28] sm:$0xff]  ;;  %v1216_v3 = vld [vmem:[%s2463_s2 + $0x38] sm:$0xff]  ;;  %v1569_v5 = vcombine.high %v2217_v1, %v2220_v2  ;;  %v1568_v6 = vcombine.low %v2217_v1, %v2220_v2 }
  0x63   : > { %957 = vmatprep.subr.bf16.mxu1 %v1537_v15  ;;  %1891 = vmac.bf16.f32.vacc0 %v217_v23, %v217_v23  ;;  %v1551_v62 = vcombine.high %v225_v59, %v226_v60  ;;  %v1550_v63 = vcombine.low %v225_v59, %v226_v60  ;;  %v1215_v4 = vld [vmem:[%s2463_s2 + $0x30] sm:$0xff]  ;;  %v228_v8 = vld [vmem:[%s2133_s9 + $0xb8] sm:$0xff]  ;;  %v1218_v9 = vld [vmem:[%s2463_s2 + $0x48] sm:$0xff] }
  0x64   : > { %1892 = vmac.bf16.f32.vacc0 %v218_v27, %v218_v27  ;;  %1067 = vmatpush1.bf16.msra.mxu0 %v1564_v45  ;;  %1232 = vperm.xlu0 %1683, %v1210_v50   ;;  %v227_v7 = vld [vmem:[%s2133_s9 + $0xb0] sm:$0xff]  ;;  %v2238_v12 = vld [vmem:[%s2133_s9 + $0x140] sm:$0xff]  ;;  %v2241_v13 = vld [vmem:[%s2133_s9 + $0x148] sm:$0xff] }
  0x65   : > { %1893 = vmac.bf16.f32.vacc0 %v219_v29, %v219_v29  ;;  %1242 = vperm.xlu1 %1684, %v1212_v51   ;;  %1068 = vmatprep.subr.bf16.mxu0 %v1567_v57  ;;  %v1553_v10 = vcombine.high %v227_v7, %v228_v8  ;;  %v1552_v11 = vcombine.low %v227_v7, %v228_v8  ;;  %v1217_v14 = vld [vmem:[%s2463_s2 + $0x40] sm:$0xff]  ;;  %v230_v18 = vld [vmem:[%s2133_s9 + $0xc8] sm:$0xff]  ;;  %v2259_v23 = vld [vmem:[%s2133_s9 + $0x150] sm:$0xff] }
  0x66   : > { %958 = vmatpush1.bf16.msra.mxu1 %v1536_v16  ;;  %1894 = vmac.bf16.f32.vacc0 %v220_v30, %v220_v30  ;;  %v1571_v15 = vcombine.high %v2238_v12, %v2241_v13  ;;  %v1570_v16 = vcombine.low %v2238_v12, %v2241_v13  ;;  %v229_v17 = vld [vmem:[%s2133_s9 + $0xc0] sm:$0xff]  ;;  %v1222_v25 = vld [vmem:[%s2463_s2 + $0x68] sm:$0xff]  ;;  %v232_v29 = vld [vmem:[%s2133_s9 + $0xd8] sm:$0xff] }
  0x67   : > { %959 = vmatprep.subr.bf16.mxu1 %v1539_v19  ;;  %1895 = vmac.bf16.f32.vacc0 %v221_v35, %v221_v35  ;;  %v1220_v19 = vld [vmem:[%s2463_s2 + $0x58] sm:$0xff]  ;;  %v1555_v21 = vcombine.high %v229_v17, %v230_v18  ;;  %v1554_v22 = vcombine.low %v229_v17, %v230_v18  ;;  %v1221_v30 = vld [vmem:[%s2463_s2 + $0x60] sm:$0xff]  ;;  %v2283_v37 = vld [vmem:[%s2133_s9 + $0x168] sm:$0xff] }
  0x68   : > { %1896 = vmac.bf16.f32.vacc0 %v222_v39, %v222_v39  ;;  %1247 = vperm.xlu0 %1683, %v1213_v56   ;;  %1069 = vmatpush1.bf16.msra.mxu0 %v1566_v58  ;;  %v1223_v38 = vld [vmem:[%s2463_s2 + $0x70] sm:$0xff]  ;;  %v234_v44 = vld [vmem:[%s2133_s9 + $0xe8] sm:$0xff] }
  0x69   : > { %1897 = vmac.bf16.f32.vacc0 %v223_v47, %v223_v47  ;;  %1252 = vperm.xlu1 %1684, %v1214_v61   ;;  %1070 = vmatprep.subr.bf16.mxu0 %v1569_v5  ;;  %v251_v47 = vld [vmem:[%s2133_s9 + $0x170] sm:$0xff]  ;;  %v1734_v58 = vld [vmem:[#allocation5] ss:$12 sps:$4 sm:$0xff]   ;;  %v1740_v61 = vld [vmem:[#allocation5 + $0x18] ss:$12 sps:$4 sm:$0xff]  }
  0x6a   : > { %960 = vmatpush1.bf16.msra.mxu1 %v1538_v20  ;;  %1898 = vmac.bf16.f32.vacc0 %v224_v48, %v224_v48  ;;  %v1219_v20 = vld [vmem:[%s2463_s2 + $0x50] sm:$0xff]  ;;  %v2296_v48 = vld [vmem:[%s2133_s9 + $0x178] sm:$0xff] }
  0x6b   : > { %961 = vmatprep.subr.bf16.mxu1 %v1541_v24  ;;  %1899 = vmac.bf16.f32.vacc0 %v225_v59, %v225_v59  ;;  %v2262_v24 = vld [vmem:[%s2133_s9 + $0x158] sm:$0xff]  ;;  %v1577_v49 = vcombine.high %v251_v47, %v2296_v48  ;;  %v1576_v50 = vcombine.low %v251_v47, %v2296_v48  ;;  %v235_v51 = vld [vmem:[%s2133_s9 + $0xf0] sm:$0xff] }
  0x6c   : > { %1257 = vperm.xlu0 %1683, %v1215_v4   ;;  %1900 = vmac.bf16.f32.vacc0 %v226_v60, %v226_v60  ;;  %1071 = vmatpush1.bf16.msra.mxu0 %v1568_v6  ;;  %v1572_v27 = vcombine.low %v2259_v23, %v2262_v24  ;;  %v1738_v59 = vld [vmem:[#allocation5 + $0x1c] ss:$12 sps:$4 sm:$0xff]   ;;  %v1737_v60 = vld [vmem:[#allocation5 + $0x20] ss:$12 sps:$4 sm:$0xff]  }
  0x6d   : > { %1262 = vperm.xlu1 %1684, %v1216_v3   ;;  %1901 = vmac.bf16.f32.vacc0 %v227_v7, %v227_v7  ;;  %1072 = vmatprep.subr.bf16.mxu0 %v1571_v15  ;;  %v1966_v7 = vmov 1935823168   ;;  %v1753_v15 = vld [vmem:[#allocation5 + $0x80] ss:$12 sps:$4 sm:$0xff]  }
  0x6e   : > { %962 = vmatpush1.bf16.msra.mxu1 %v1540_v26  ;;  %1902 = vmac.bf16.f32.vacc0 %v228_v8, %v228_v8  ;;  %v1573_v26 = vcombine.high %v2259_v23, %v2262_v24  ;;  %v1931_v8 = vunpack.c.l.s4 %v1966_v7 }
  0x6f   : > { %963 = vmatprep.subr.bf16.mxu1 %v1543_v28  ;;  %1903 = vmac.bf16.f32.vacc0 %v229_v17, %v229_v17  ;;  %v231_v28 = vld [vmem:[%s2133_s9 + $0xd0] sm:$0xff] }
  0x70   : > { %1267 = vperm.xlu0 %1683, %v1217_v14   ;;  %1073 = vmatpush1.bf16.msra.mxu0 %v1570_v16  ;;  %1904 = vmac.bf16.f32.vacc0 %v230_v18, %v230_v18  ;;  %v1556_v35 = vcombine.low %v231_v28, %v232_v29  ;;  %v1756_v16 = vld [vmem:[#allocation5 + $0x78] ss:$12 sps:$4 sm:$0xff]   ;;  %v1758_v17 = vld [vmem:[#allocation5 + $0x94] ss:$12 sps:$4 sm:$0xff]  }
  0x71   : > { %1272 = vperm.xlu1 %1684, %v1218_v9   ;;  %1074 = vmatprep.subr.bf16.mxu0 %v1573_v26  ;;  %1905 = vmac.bf16.f32.vacc0 %v231_v28, %v231_v28  ;;  %v1932_v9 = vunpack.c.0.s8 %v1931_v8  ;;  %v1757_v18 = vld [vmem:[#allocation5 + $0x98] ss:$12 sps:$4 sm:$0xff]  }
  0x72   : > { %964 = vmatpush1.bf16.msra.mxu1 %v1542_v31  ;;  %v1224_v31 = vld [vmem:[%s2463_s2 + $0x78] sm:$0xff]  ;;  %1906 = vmac.bf16.f32.vacc0 %v232_v29, %v232_v29 }
  0x73   : > { %965 = vmatprep.subr.bf16.mxu1 %v1545_v34  ;;  %v1557_v34 = vcombine.high %v231_v28, %v232_v29 }
  0x74   : > { %1277 = vperm.xlu0 %1683, %v1219_v20   ;;  %1075 = vmatpush1.bf16.msra.mxu0 %v1572_v27  ;;  %v1762_v20 = vld [vmem:[#allocation5 + $0xac] ss:$12 sps:$4 sm:$0xff]  }
  0x75   : > { %1282 = vperm.xlu1 %1684, %v1220_v19   ;;  %v1760_v19 = vld [vmem:[#allocation5 + $0x90] ss:$12 sps:$4 sm:$0xff]  }
  0x76   : > { %966 = vmatpush1.bf16.msra.mxu1 %v1544_v36  ;;  %v2280_v36 = vld [vmem:[%s2133_s9 + $0x160] sm:$0xff] }
  0x77   : > { %967 = vmatprep.subr.bf16.mxu1 %v1547_v41  ;;  %v1575_v39 = vcombine.high %v2280_v36, %v2283_v37  ;;  %v1574_v41 = vcombine.low %v2280_v36, %v2283_v37 }
  0x78   : > { %1287 = vperm.xlu0 %1683, %v1221_v30  }
  0x79   : > { %1292 = vperm.xlu1 %1684, %v1222_v25   ;;  %1076 = vmatprep.subr.bf16.mxu0 %v1575_v39 }
  0x7a   : > { %968 = vmatpush1.bf16.msra.mxu1 %v1546_v43  ;;  %v233_v43 = vld [vmem:[%s2133_s9 + $0xe0] sm:$0xff]  ;;  %1077 = vmatpush1.bf16.msra.mxu0 %v1574_v41 }
  0x7b   : > { %969 = vmatprep.subr.bf16.mxu1 %v1549_v52  ;;  %v1559_v45 = vcombine.high %v233_v43, %v234_v44  ;;  %v1558_v46 = vcombine.low %v233_v43, %v234_v44  ;;  %1907 = vmac.bf16.f32.vacc0 %v233_v43, %v233_v43  ;;  %v236_v52 = vld [vmem:[%s2133_s9 + $0xf8] sm:$0xff]  ;;  %1078 = vmatprep.subr.bf16.mxu0 %v1577_v49  ;;  %s1505_s9 = sshll.u32 %s2129_s6, 8 }
  0x7c   : > { %1297 = vperm.xlu0 %1683, %v1223_v38   ;;  %1908 = vmac.bf16.f32.vacc0 %v234_v44, %v234_v44  ;;  %v1561_v56 = vcombine.high %v235_v51, %v236_v52  ;;  %v1560_v57 = vcombine.low %v235_v51, %v236_v52  ;;  %s2348_s18 = scalar_lea.vmem [#allocation7], %s1505_s9 }
  0x7d   : > { %1302 = vperm.xlu1 %1684, %v1224_v31   ;;  %1909 = vmac.bf16.f32.vacc0 %v235_v51, %v235_v51  ;;  %s1415_s4 = sshll.u32 %s2348_s18, 4  ;;  %s2414_s4 = int_to_ptr.vmem [resolvable:$true] %s1415_s4 }
  0x7e   : > { %970 = vmatpush1.bf16.msra.mxu1 %v1548_v53  ;;  %v1733_v53 = vld [vmem:[#allocation5 + $0x8] ss:$12 sps:$4 sm:$0xff]   ;;  %1079 = vmatpush1.bf16.msra.mxu0 %v1576_v50  ;;  %1910 = vmac.bf16.f32.vacc0 %v236_v52, %v236_v52  ;;  %s1823_s10 = scalar_lea.vmem %s2414_s4, 4096  ;;  %p1830_p10 = scmp.lt.s32.totalorder %s2414_s4, %s1828_s27 }
  0x7f   : > { %971 = vmatprep.subr.bf16.mxu1 %v1551_v62  ;;  %1911 = vmac.bf16.f32.vacc0 %v2163_v32, %v2163_v32  ;;  %v1742_v62 = vld [vmem:[#allocation5 + $0x34] ss:$12 sps:$4 sm:$0xff]   ;;  %v1741_v32 = vld [vmem:[#allocation5 + $0x38] ss:$12 sps:$4 sm:$0xff]   ;;  %p1824_p4 = scmp.ne.s32.totalorder %s2414_s4, %s1823_s10  ;;  %p1831_p13 = scmp.lt.s32.totalorder %s1829_s28, %s1823_s10 }
  0x80   : > { %1912 = vmac.bf16.f32.vacc0 %v2166_v33, %v2166_v33  ;;  %v1744_v33 = vld [vmem:[#allocation5 + $0x30] ss:$12 sps:$4 sm:$0xff]  }
  0x81   : > { %1097 = vmatmul.mubr.bf16.vlgmr.msra.gmra.mrb[0].mxu0 %v1733_v53  ;;  %1913 = vmac.bf16.f32.vacc0 %v2175_v40, %v2175_v40  ;;  %v1746_v40 = vld [vmem:[#allocation5 + $0x4c] ss:$12 sps:$4 sm:$0xff]   ;;  %p1825_p6 = pnand %p1824_p4, %p2081_p12  ;;  %p1832_p3 = por %p1831_p13, %p1830_p10 }
  0x82   : > { %972 = vmatpush1.bf16.msra.mxu1 %v1550_v63  ;;  %1106 = vmatprep.mubr.bf16.mxu0 %v1965_v0  ;;  %1914 = vmac.bf16.f32.vacc0 %v2178_v42, %v2178_v42  ;;  %v1745_v42 = vld [vmem:[#allocation5 + $0x50] ss:$12 sps:$4 sm:$0xff]   ;;  %v1749_v63 = vld [vmem:[#allocation5 + $0x68] ss:$12 sps:$4 sm:$0xff]  }
  0x83   : > { %973 = vmatprep.subr.bf16.mxu1 %v1553_v10  ;;  %1915 = vmac.bf16.f32.vacc0 %v2199_v54, %v2199_v54  ;;  %v1748_v54 = vld [vmem:[#allocation5 + $0x48] ss:$12 sps:$4 sm:$0xff]   ;;  %v1933_v10 = vlaneseq  ;;  %p1826_p8 = pneg %p1825_p6 }
  0x84   : > { %1916 = vmac.bf16.f32.vacc0 %v2202_v55, %v2202_v55  ;;  %v1750_v55 = vld [vmem:[#allocation5 + $0x64] ss:$12 sps:$4 sm:$0xff]  }
  0x85   : > { %1917 = vmac.bf16.f32.vacc0 %v2217_v1, %v2217_v1  ;;  %v1752_v1 = vld [vmem:[#allocation5 + $0x60] ss:$12 sps:$4 sm:$0xff]   ;;  %p1833_p7 = pnand %p1832_p3, %p1826_p8 }
  0x86   : > { %974 = vmatpush1.bf16.msra.mxu1 %v1552_v11  ;;  %1918 = vmac.bf16.f32.vacc0 %v2220_v2, %v2220_v2  ;;  %v1754_v2 = vld [vmem:[#allocation5 + $0x7c] ss:$12 sps:$4 sm:$0xff]   ;;  %v1934_v11 = vshrl.u32 %v1933_v10, 7 }
  0x87   : > { %975 = vmatprep.subr.bf16.mxu1 %v1555_v21  ;;  %1919 = vmac.bf16.f32.vacc0 %v2238_v12, %v2238_v12  ;;  %v1761_v21 = vld [vmem:[#allocation5 + $0xb0] ss:$12 sps:$4 sm:$0xff]  }
  0x88   : > { %1920 = vmac.bf16.f32.vacc0 %v2241_v13, %v2241_v13  ;;  %v1935_v12 = vsub.s32 %v1932_v9, %v1934_v11 }
  0x89   : > { %1107 = vmatmul.mubr.bf16.gmra.mrb[4].mxu0 %v1737_v60  ;;  %1921 = vmac.bf16.f32.vacc0 %v2259_v23, %v2259_v23 }
  0x8a   : > { %976 = vmatpush1.bf16.msra.mxu1 %v1554_v22  ;;  %1116 = vmatprep.mubr.bf16.mxu0 %v1965_v0  ;;  %1922 = vmac.bf16.f32.vacc0 %v2262_v24, %v2262_v24  ;;  %v1764_v22 = vld [vmem:[#allocation5 + $0xa8] ss:$12 sps:$4 sm:$0xff]  }
  0x8b   : > { %977 = vmatprep.subr.bf16.mxu1 %v1557_v34  ;;  %1923 = vmac.bf16.f32.vacc0 %v2280_v36, %v2280_v36 }
  0x8c   : > { %1924 = vmac.bf16.f32.vacc0 %v2283_v37, %v2283_v37 }
  0x8d   : > { %1925 = vmac.bf16.f32.vacc0 %v251_v47, %v251_v47 }
  0x8e   : > { %978 = vmatpush1.bf16.msra.mxu1 %v1556_v35  ;;  %1926 = vmac.bf16.f32.vacc0 %v2296_v48, %v2296_v48 }
  0x8f   : > { %979 = vmatprep.subr.bf16.mxu1 %v1559_v45 }
  0x90   : > { %v1927_v3 = vmovacc.add.low.vacc0 }
  0x91   : > { %1117 = vmatmul.mubr.bf16.gmra.mrb[8].mxu0 %v1741_v32  ;;  %v1928_v4 = vmovacc.add.high.vacc0 }
  0x92   : > { %980 = vmatpush1.bf16.msra.mxu1 %v1558_v46  ;;  %1126 = vmatprep.mubr.bf16.mxu0 %v1965_v0 }
  0x93   : > { %981 = vmatprep.subr.bf16.mxu1 %v1561_v56  ;;  %v1929_v5 = vcombine.low %v1927_v3, %v1928_v4  ;;  %v1930_v6 = vcombine.high %v1927_v3, %v1928_v4 }
  0x95   : > { %v1936_v13 = vrot.slane %v1929_v5, %v1935_v12  ;;  %v1942_v14 = vrot.slane %v1930_v6, %v1935_v12 }
  0x96   : > { %982 = vmatpush1.bf16.msra.mxu1 %v1560_v57 }
  0x97   : > { %v492_v23 = vrot.slane %v1936_v13, 4  ;;  %v545_v24 = vrot.slane %v1942_v14, 4 }
  0x99   : > { %984 = vmatmul.mubr.bf16.vlgmr.msra.gmra.mrb[0].mxu1 %v1734_v58  ;;  %1127 = vmatmul.mubr.bf16.gmra.mrb[12].mxu0 %v1745_v42  ;;  %v493_v25 = vadd.f32 %v1936_v13, %v492_v23  ;;  %v546_v26 = vadd.f32 %v1942_v14, %v545_v24 }
  0x9a   : > { %993 = vmatprep.mubr.bf16.mxu1 %v1738_v59  ;;  %1136 = vmatprep.mubr.bf16.mxu0 %v1965_v0 }
  0x9b   : > { %v494_v27 = vrot.slane %v493_v25, 2  ;;  %v547_v28 = vrot.slane %v546_v26, 2 }
  0x9d   : > { %v495_v29 = vadd.f32 %v494_v27, %v493_v25  ;;  %v548_v30 = vadd.f32 %v547_v28, %v546_v26 }
  0x9f   : > { %v496_v31 = vrot.slane %v495_v29, 1  ;;  %v549_v34 = vrot.slane %v548_v30, 1 }
  0xa1   : > { %994 = vmatmul.mubr.bf16.gmra.mrb[4].mxu1 %v1740_v61  ;;  %1137 = vmatmul.mubr.bf16.gmra.mrb[16].mxu0 %v1749_v63  ;;  %v2339_v37 = vadd.f32 %v496_v31, %v495_v29  ;;  %v2341_v39 = vadd.f32 %v549_v34, %v548_v30 }
  0xa2   : > { %1003 = vmatprep.mubr.bf16.mxu1 %v1742_v62  ;;  %1146 = vmatprep.mubr.bf16.mxu0 %v1965_v0 }
  0xa9   : > { %1004 = vmatmul.mubr.bf16.gmra.mrb[8].mxu1 %v1744_v33  ;;  %1147 = vmatmul.mubr.bf16.gmra.mrb[20].mxu0 %v1753_v15 }
  0xaa   : > { %1013 = vmatprep.mubr.bf16.mxu1 %v1746_v40  ;;  %1156 = vmatprep.mubr.bf16.mxu0 %v1965_v0 }
  0xb1   : > { %1014 = vmatmul.mubr.bf16.gmra.mrb[12].mxu1 %v1748_v54  ;;  %1157 = vmatmul.mubr.bf16.gmra.mrb[24].mxu0 %v1757_v18 }
  0xb2   : > { %1023 = vmatprep.mubr.bf16.mxu1 %v1750_v55  ;;  %1166 = vmatprep.mubr.bf16.mxu0 %v1965_v0 }
  0xb9   : > { %1024 = vmatmul.mubr.bf16.gmra.mrb[16].mxu1 %v1752_v1  ;;  %1167 = vmatmul.mubr.bf16.gmra.mrb[28].mxu0 %v1761_v21 }
  0xba   : > { %1033 = vmatprep.mubr.bf16.mxu1 %v1754_v2 }
  0xc1   : > { %1034 = vmatmul.mubr.bf16.gmra.mrb[20].mxu1 %v1756_v16 }
  0xc2   : > { %1043 = vmatprep.mubr.bf16.mxu1 %v1758_v17 }
  0xc9   : > { %1044 = vmatmul.mubr.bf16.gmra.mrb[24].mxu1 %v1760_v19 }
  0xca   : > { %1053 = vmatprep.mubr.bf16.mxu1 %v1762_v20 }
  0xd1   : > { %1054 = vmatmul.mubr.bf16.gmra.mrb[28].mxu1 %v1764_v22 }
  0xdf   : > { %v1228_v0 = vpop.permute.xlu0 %1227 }
  0xe0   : > { %v1238_v33 = vpop.permute.xlu1 %1237 }
  0xe3   : > { %v1233_v53 = vpop.permute.xlu0 %1232 }
  0xe4   : > { %v1243_v16 = vpop.permute.xlu1 %1242 }
 0x154   : > { %v1098_v35 = vpop.f32.mrb[0].mxu0 }
 0x155   : > { %v1100_v36 = vpop.f32.mrb[1].mxu0 }
 0x156   : > { %v1102_v38 = vpop.f32.mrb[2].mxu0 }
 0x157   : > { %v1104_v43 = vpop.f32.mrb[3].mxu0 }
 0x15c   : > { %v1108_v58 = vpop.f32.mrb[4].mxu0 }
 0x15d   : > { %v1110_v61 = vpop.f32.mrb[5].mxu0 }
 0x15e   : > { %v1112_v40 = vpop.f32.mrb[6].mxu0 }
 0x15f   : > { %v1114_v63 = vpop.f32.mrb[7].mxu0 }
 0x164   : > { %v1118_v14 = vpop.f32.mrb[8].mxu0 }
 0x165   : > { %v1120_v18 = vpop.f32.mrb[9].mxu0 }
 0x166   : > { %v1122_v21 = vpop.f32.mrb[10].mxu0 }
 0x167   : > { %v1124_v25 = vpop.f32.mrb[11].mxu0 }
 0x16c   : > { %v985_v41 = vpop.f32.mrb[0].mxu1 }
 0x16d   : > { %v1099_v44 = vadd.f32 %v1098_v35, %v985_v41  ;;  %v987_v45 = vpop.f32.mrb[1].mxu1 }
 0x16e   : > { %v1101_v46 = vadd.f32 %v1100_v36, %v987_v45  ;;  %v989_v47 = vpop.f32.mrb[2].mxu1  ;;  %v1128_v45 = vpop.f32.mrb[12].mxu0 }
 0x16f   : > { %v1177_v48 = vadd.f32 %v1099_v44, %v2339_v37  ;;  %v1103_v49 = vadd.f32 %v1102_v38, %v989_v47  ;;  %v991_v50 = vpop.f32.mrb[3].mxu1 }
 0x170   : > { %v1178_v51 = vadd.f32 %v1101_v46, %v2341_v39  ;;  %v1105_v52 = vadd.f32 %v1104_v43, %v991_v50  ;;  %v1253_v46 = vpop.permute.xlu1 %1252 }
 0x171   : > { %v1305_v56 = vadd.f32 %v1228_v0, %v1177_v48  ;;  %v1179_v57 = vadd.f32 %v1103_v49, %v2339_v37  ;;  %v1130_v49 = vpop.f32.mrb[13].mxu0 }
 0x172   : > { %v1306_v59 = vadd.f32 %v1228_v0, %v1178_v51  ;;  %v1180_v60 = vadd.f32 %v1105_v52, %v2341_v39  ;;  %v1248_v0 = vpop.permute.xlu0 %1247  ;;  %v1132_v52 = vpop.f32.mrb[14].mxu0 }
 0x173   : > { %v1337_v62 = vmax.f32 %v1305_v56, 0.0  ;;  %v1307_v32 = vadd.f32 %v1233_v53, %v1179_v57 }
 0x174   : > { %v1338_v42 = vmax.f32 %v1306_v59, 0.0  ;;  %v1308_v54 = vadd.f32 %v1233_v53, %v1180_v60  ;;  %v995_v55 = vpop.f32.mrb[4].mxu1 }
 0x175   : > { %1369 = vst [vmem:[%s2348_s18] sm:$0xff] %v1337_v62  ;;  %v1339_v1 = vmax.f32 %v1307_v32, 0.0  ;;  %v1109_v2 = vadd.f32 %v1108_v58, %v995_v55  ;;  %v997_v3 = vpop.f32.mrb[5].mxu1  ;;  %v1134_v58 = vpop.f32.mrb[15].mxu0 }
 0x176   : > { %1370 = vst [vmem:[%s2348_s18 + $0x8] sm:$0xff] %v1338_v42  ;;  %v1340_v4 = vmax.f32 %v1308_v54, 0.0  ;;  %v1111_v5 = vadd.f32 %v1110_v61, %v997_v3  ;;  %v999_v6 = vpop.f32.mrb[6].mxu1  ;;  %v1258_v55 = vpop.permute.xlu0 %1257 }
 0x177   : > { %1371 = vst [vmem:[%s2348_s18 + $0x10] sm:$0xff] %v1339_v1  ;;  %v1181_v7 = vadd.f32 %v1109_v2, %v2339_v37  ;;  %v1113_v8 = vadd.f32 %v1112_v40, %v999_v6  ;;  %v1001_v9 = vpop.f32.mrb[7].mxu1 }
 0x178   : > { %1372 = vst [vmem:[%s2348_s18 + $0x18] sm:$0xff] %v1340_v4  ;;  %v1182_v10 = vadd.f32 %v1111_v5, %v2341_v39  ;;  %v1115_v11 = vadd.f32 %v1114_v63, %v1001_v9  ;;  %v1138_v4 = vpop.f32.mrb[16].mxu0  ;;  %v1263_v5 = vpop.permute.xlu1 %1262 }
 0x179   : > { %v1309_v12 = vadd.f32 %v1238_v33, %v1181_v7  ;;  %v1183_v13 = vadd.f32 %v1113_v8, %v2339_v37  ;;  %v1140_v8 = vpop.f32.mrb[17].mxu0 }
 0x17a   : > { %v1310_v15 = vadd.f32 %v1238_v33, %v1182_v10  ;;  %v1184_v17 = vadd.f32 %v1115_v11, %v2341_v39  ;;  %v1142_v11 = vpop.f32.mrb[18].mxu0 }
 0x17b   : > { %v1341_v19 = vmax.f32 %v1309_v12, 0.0  ;;  %v1311_v20 = vadd.f32 %v1243_v16, %v1183_v13 }
 0x17c   : > { %v1342_v22 = vmax.f32 %v1310_v15, 0.0  ;;  %v1312_v23 = vadd.f32 %v1243_v16, %v1184_v17  ;;  %v1005_v24 = vpop.f32.mrb[8].mxu1  ;;  %v1144_v15 = vpop.f32.mrb[19].mxu0 }
 0x17d   : > { %1373 = vst [vmem:[%s2348_s18 + $0x20] sm:$0xff] %v1341_v19  ;;  %v1343_v26 = vmax.f32 %v1311_v20, 0.0  ;;  %v1119_v27 = vadd.f32 %v1118_v14, %v1005_v24  ;;  %v1007_v28 = vpop.f32.mrb[9].mxu1 }
 0x17e   : > { %1374 = vst [vmem:[%s2348_s18 + $0x28] sm:$0xff] %v1342_v22  ;;  %v1344_v29 = vmax.f32 %v1312_v23, 0.0  ;;  %v1121_v30 = vadd.f32 %v1120_v18, %v1007_v28  ;;  %v1009_v31 = vpop.f32.mrb[10].mxu1 }
 0x17f   : > { %1375 = vst [vmem:[%s2348_s18 + $0x30] sm:$0xff] %v1343_v26  ;;  %v1185_v34 = vadd.f32 %v1119_v27, %v2339_v37  ;;  %v1123_v35 = vadd.f32 %v1122_v21, %v1009_v31  ;;  %v1011_v36 = vpop.f32.mrb[11].mxu1  ;;  %v1273_v31 = vpop.permute.xlu1 %1272 }
 0x180   : > { %1376 = vst [vmem:[%s2348_s18 + $0x38] sm:$0xff] %v1344_v29  ;;  %v1186_v38 = vadd.f32 %v1121_v30, %v2341_v39  ;;  %v1125_v41 = vadd.f32 %v1124_v25, %v1011_v36  ;;  %v1268_v25 = vpop.permute.xlu0 %1267  ;;  %v1148_v30 = vpop.f32.mrb[20].mxu0 }
 0x181   : > { %v1313_v43 = vadd.f32 %v1248_v0, %v1185_v34  ;;  %v1187_v44 = vadd.f32 %v1123_v35, %v2339_v37  ;;  %v1150_v36 = vpop.f32.mrb[21].mxu0 }
 0x182   : > { %v1314_v47 = vadd.f32 %v1248_v0, %v1186_v38  ;;  %v1188_v48 = vadd.f32 %v1125_v41, %v2341_v39  ;;  %v1152_v41 = vpop.f32.mrb[22].mxu0 }
 0x183   : > { %v1345_v50 = vmax.f32 %v1313_v43, 0.0  ;;  %v1315_v51 = vadd.f32 %v1253_v46, %v1187_v44 }
 0x184   : > { %v1346_v53 = vmax.f32 %v1314_v47, 0.0  ;;  %v1316_v56 = vadd.f32 %v1253_v46, %v1188_v48  ;;  %v1015_v57 = vpop.f32.mrb[12].mxu1  ;;  %v1154_v46 = vpop.f32.mrb[23].mxu0 }
 0x185   : > { %1377 = vst [vmem:[%s2348_s18 + $0x40] sm:$0xff] %v1345_v50  ;;  %v1347_v59 = vmax.f32 %v1315_v51, 0.0  ;;  %v1129_v60 = vadd.f32 %v1128_v45, %v1015_v57  ;;  %v1017_v61 = vpop.f32.mrb[13].mxu1 }
 0x186   : > { %1378 = vst [vmem:[%s2348_s18 + $0x48] sm:$0xff] %v1346_v53  ;;  %v1348_v62 = vmax.f32 %v1316_v56, 0.0  ;;  %v1131_v32 = vadd.f32 %v1130_v49, %v1017_v61  ;;  %v1019_v33 = vpop.f32.mrb[14].mxu1 }
 0x187   : > { %1379 = vst [vmem:[%s2348_s18 + $0x50] sm:$0xff] %v1347_v59  ;;  %v1189_v40 = vadd.f32 %v1129_v60, %v2339_v37  ;;  %v1133_v42 = vadd.f32 %v1132_v52, %v1019_v33  ;;  %v1021_v54 = vpop.f32.mrb[15].mxu1  ;;  %v1283_v33 = vpop.permute.xlu1 %1282 }
 0x188   : > { %1380 = vst [vmem:[%s2348_s18 + $0x58] sm:$0xff] %v1348_v62  ;;  %v1190_v63 = vadd.f32 %v1131_v32, %v2341_v39  ;;  %v1135_v1 = vadd.f32 %v1134_v58, %v1021_v54  ;;  %v1278_v58 = vpop.permute.xlu0 %1277  ;;  %v1158_v32 = vpop.f32.mrb[24].mxu0 }
 0x189   : > { %v1317_v2 = vadd.f32 %v1258_v55, %v1189_v40  ;;  %v1191_v3 = vadd.f32 %v1133_v42, %v2339_v37  ;;  %v1160_v54 = vpop.f32.mrb[25].mxu0 }
 0x18a   : > { %v1318_v6 = vadd.f32 %v1258_v55, %v1190_v63  ;;  %v1192_v7 = vadd.f32 %v1135_v1, %v2341_v39  ;;  %v1162_v1 = vpop.f32.mrb[26].mxu0 }
 0x18b   : > { %v1349_v9 = vmax.f32 %v1317_v2, 0.0  ;;  %v1319_v10 = vadd.f32 %v1263_v5, %v1191_v3 }
 0x18c   : > { %v1350_v12 = vmax.f32 %v1318_v6, 0.0  ;;  %v1320_v13 = vadd.f32 %v1263_v5, %v1192_v7  ;;  %v1025_v14 = vpop.f32.mrb[16].mxu1  ;;  %v1164_v5 = vpop.f32.mrb[27].mxu0 }
 0x18d   : > { %1381 = vst [vmem:[%s2348_s18 + $0x60] sm:$0xff] %v1349_v9  ;;  %v1351_v16 = vmax.f32 %v1319_v10, 0.0  ;;  %v1139_v17 = vadd.f32 %v1138_v4, %v1025_v14  ;;  %v1027_v18 = vpop.f32.mrb[17].mxu1 }
 0x18e   : > { %1382 = vst [vmem:[%s2348_s18 + $0x68] sm:$0xff] %v1350_v12  ;;  %v1352_v19 = vmax.f32 %v1320_v13, 0.0  ;;  %v1141_v20 = vadd.f32 %v1140_v8, %v1027_v18  ;;  %v1029_v21 = vpop.f32.mrb[18].mxu1 }
 0x18f   : > { %1383 = vst [vmem:[%s2348_s18 + $0x70] sm:$0xff] %v1351_v16  ;;  %v1193_v22 = vadd.f32 %v1139_v17, %v2339_v37  ;;  %v1143_v23 = vadd.f32 %v1142_v11, %v1029_v21  ;;  %v1031_v24 = vpop.f32.mrb[19].mxu1  ;;  %v1293_v21 = vpop.permute.xlu1 %1292 }
 0x190   : > { %1384 = vst [vmem:[%s2348_s18 + $0x78] sm:$0xff] %v1352_v19  ;;  %v1194_v26 = vadd.f32 %v1141_v20, %v2341_v39  ;;  %v1145_v27 = vadd.f32 %v1144_v15, %v1031_v24  ;;  %v1288_v15 = vpop.permute.xlu0 %1287  ;;  %v1168_v20 = vpop.f32.mrb[28].mxu0 }
 0x191   : > { %v1321_v28 = vadd.f32 %v1268_v25, %v1193_v22  ;;  %v1195_v29 = vadd.f32 %v1143_v23, %v2339_v37  ;;  %v1170_v24 = vpop.f32.mrb[29].mxu0 }
 0x192   : > { %v1322_v34 = vadd.f32 %v1268_v25, %v1194_v26  ;;  %v1196_v35 = vadd.f32 %v1145_v27, %v2341_v39  ;;  %v1172_v27 = vpop.f32.mrb[30].mxu0 }
 0x193   : > { %v1353_v0 = vmax.f32 %v1321_v28, 0.0  ;;  %v1323_v38 = vadd.f32 %v1273_v31, %v1195_v29 }
 0x194   : > { %v1354_v43 = vmax.f32 %v1322_v34, 0.0  ;;  %v1324_v44 = vadd.f32 %v1273_v31, %v1196_v35  ;;  %v1035_v45 = vpop.f32.mrb[20].mxu1  ;;  %v1174_v31 = vpop.f32.mrb[31].mxu0 }
 0x195   : > { %1385 = vst [vmem:[%s2348_s18 + $0x80] sm:$0xff] %v1353_v0  ;;  %v1355_v47 = vmax.f32 %v1323_v38, 0.0  ;;  %v1149_v48 = vadd.f32 %v1148_v30, %v1035_v45  ;;  %v1037_v49 = vpop.f32.mrb[21].mxu1 }
 0x196   : > { %1386 = vst [vmem:[%s2348_s18 + $0x88] sm:$0xff] %v1354_v43  ;;  %v1356_v50 = vmax.f32 %v1324_v44, 0.0  ;;  %v1151_v51 = vadd.f32 %v1150_v36, %v1037_v49  ;;  %v1039_v52 = vpop.f32.mrb[22].mxu1 }
 0x197   : > { %1387 = vst [vmem:[%s2348_s18 + $0x90] sm:$0xff] %v1355_v47  ;;  %v1197_v53 = vadd.f32 %v1149_v48, %v2339_v37  ;;  %v1153_v56 = vadd.f32 %v1152_v41, %v1039_v52  ;;  %v1041_v57 = vpop.f32.mrb[23].mxu1 }
 0x198   : > { %1388 = vst [vmem:[%s2348_s18 + $0x98] sm:$0xff] %v1356_v50  ;;  %v1198_v59 = vadd.f32 %v1151_v51, %v2341_v39  ;;  %v1155_v60 = vadd.f32 %v1154_v46, %v1041_v57  ;;  %v1298_v46 = vpop.permute.xlu0 %1297  ;;  %v1303_v51 = vpop.permute.xlu1 %1302 }
 0x199   : > { %v1325_v61 = vadd.f32 %v1278_v58, %v1197_v53  ;;  %v1199_v62 = vadd.f32 %v1153_v56, %v2339_v37 }
 0x19a   : > { %v1326_v40 = vadd.f32 %v1278_v58, %v1198_v59  ;;  %v1200_v42 = vadd.f32 %v1155_v60, %v2341_v39 }
 0x19b   : > { %v1357_v55 = vmax.f32 %v1325_v61, 0.0  ;;  %v1327_v63 = vadd.f32 %v1283_v33, %v1199_v62 }
 0x19c   : > { %v1358_v2 = vmax.f32 %v1326_v40, 0.0  ;;  %v1328_v3 = vadd.f32 %v1283_v33, %v1200_v42  ;;  %v1045_v4 = vpop.f32.mrb[24].mxu1 }
 0x19d   : > { %1389 = vst [vmem:[%s2348_s18 + $0xa0] sm:$0xff] %v1357_v55  ;;  %v1359_v6 = vmax.f32 %v1327_v63, 0.0  ;;  %v1159_v7 = vadd.f32 %v1158_v32, %v1045_v4  ;;  %v1047_v8 = vpop.f32.mrb[25].mxu1 }
 0x19e   : > { %1390 = vst [vmem:[%s2348_s18 + $0xa8] sm:$0xff] %v1358_v2  ;;  %v1360_v9 = vmax.f32 %v1328_v3, 0.0  ;;  %v1161_v10 = vadd.f32 %v1160_v54, %v1047_v8  ;;  %v1049_v11 = vpop.f32.mrb[26].mxu1 }
 0x19f   : > { %1391 = vst [vmem:[%s2348_s18 + $0xb0] sm:$0xff] %v1359_v6  ;;  %v1201_v12 = vadd.f32 %v1159_v7, %v2339_v37  ;;  %v1163_v13 = vadd.f32 %v1162_v1, %v1049_v11  ;;  %v1051_v14 = vpop.f32.mrb[27].mxu1 }
 0x1a0   : > { %1392 = vst [vmem:[%s2348_s18 + $0xb8] sm:$0xff] %v1360_v9  ;;  %v1202_v16 = vadd.f32 %v1161_v10, %v2341_v39  ;;  %v1165_v17 = vadd.f32 %v1164_v5, %v1051_v14 }
 0x1a1   : > { %v1329_v18 = vadd.f32 %v1288_v15, %v1201_v12  ;;  %v1203_v19 = vadd.f32 %v1163_v13, %v2339_v37 }
 0x1a2   : > { %v1330_v22 = vadd.f32 %v1288_v15, %v1202_v16  ;;  %v1204_v23 = vadd.f32 %v1165_v17, %v2341_v39 }
 0x1a3   : > { %v1361_v25 = vmax.f32 %v1329_v18, 0.0  ;;  %v1331_v26 = vadd.f32 %v1293_v21, %v1203_v19 }
 0x1a4   : > { %v1362_v28 = vmax.f32 %v1330_v22, 0.0  ;;  %v1332_v29 = vadd.f32 %v1293_v21, %v1204_v23  ;;  %v1055_v30 = vpop.f32.mrb[28].mxu1 }
 0x1a5   : > { %1393 = vst [vmem:[%s2348_s18 + $0xc0] sm:$0xff] %v1361_v25  ;;  %v1363_v34 = vmax.f32 %v1331_v26, 0.0  ;;  %v1169_v35 = vadd.f32 %v1168_v20, %v1055_v30  ;;  %v1057_v36 = vpop.f32.mrb[29].mxu1 }
 0x1a6   : > { %1394 = vst [vmem:[%s2348_s18 + $0xc8] sm:$0xff] %v1362_v28  ;;  %v1364_v0 = vmax.f32 %v1332_v29, 0.0  ;;  %v1171_v38 = vadd.f32 %v1170_v24, %v1057_v36  ;;  %v1059_v41 = vpop.f32.mrb[30].mxu1 }
 0x1a7   : > { %1395 = vst [vmem:[%s2348_s18 + $0xd0] sm:$0xff] %v1363_v34  ;;  %v1205_v43 = vadd.f32 %v1169_v35, %v2339_v37  ;;  %v1173_v44 = vadd.f32 %v1172_v27, %v1059_v41  ;;  %v1061_v45 = vpop.f32.mrb[31].mxu1 }
 0x1a8   : > { %1396 = vst [vmem:[%s2348_s18 + $0xd8] sm:$0xff] %v1364_v0  ;;  %v1206_v47 = vadd.f32 %v1171_v38, %v2341_v39  ;;  %v1175_v48 = vadd.f32 %v1174_v31, %v1061_v45 }
 0x1a9   : > { %v1333_v49 = vadd.f32 %v1298_v46, %v1205_v43  ;;  %v1207_v50 = vadd.f32 %v1173_v44, %v2339_v37 }
 0x1aa   : > { %v1334_v52 = vadd.f32 %v1298_v46, %v1206_v47  ;;  %v1208_v53 = vadd.f32 %v1175_v48, %v2341_v39 }
 0x1ab   : > { %v1365_v56 = vmax.f32 %v1333_v49, 0.0  ;;  %v1335_v57 = vadd.f32 %v1303_v51, %v1207_v50 }
 0x1ac   : > { %v1366_v58 = vmax.f32 %v1334_v52, 0.0  ;;  %v1336_v59 = vadd.f32 %v1303_v51, %v1208_v53 }
 0x1ad   : > { %1397 = vst [vmem:[%s2348_s18 + $0xe0] sm:$0xff] %v1365_v56  ;;  %v1367_v60 = vmax.f32 %v1335_v57, 0.0 }
 0x1ae   : > { %1398 = vst [vmem:[%s2348_s18 + $0xe8] sm:$0xff] %v1366_v58  ;;  %v1368_v37 = vmax.f32 %v1336_v59, 0.0 }
 0x1af   : > { %1399 = vst [vmem:[%s2348_s18 + $0xf0] sm:$0xff] %v1367_v60 }
 0x1b0   : > { %1400 = vst [vmem:[%s2348_s18 + $0xf8] sm:$0xff] %v1368_v37 }
 0x1b1   : > { %1836 = shalt.err (!%p1833_p7)
}
 0x1b2   : > { %s1837_s29 = scalar_lea.hbm %s2412_s5, 4096  ;;  %s1841_s25 = scalar_lea.hbm %s2464_s3, 8192 }
 0x1b3   : > { %p1838_p9 = scmp.ne.s32.totalorder %s2412_s5, %s1837_s29  ;;  %p1842_p5 = scmp.lt.u32.totalorder %s2412_s5, %s2464_s3 }
 0x1b4   : > { %p1843_p11 = scmp.lt.u32.totalorder %s1841_s25, %s1837_s29  ;;  %p1845_p4 = scmp.lt.u32.totalorder %s1837_s29, %s2412_s5 }
 0x1b5   : > { %p1839_p2 = pnand %p1838_p9, %p2081_p12 }
 0x1b6   : > { %p1844_p1 = por %p1843_p11, %p1842_p5 }
 0x1b7   : > { %p1840_p0 = pneg %p1839_p2 }
 0x1b8   : > { %p1846_p6 = por %p1845_p4, %p1844_p1 }
 0x1ba   : > { %p1847_p8 = pnand %p1846_p6, %p1840_p0 }
 0x1bc   : > { %1850 = shalt.err (!%p1847_p8)
}
 0x1bd   : > { %s1968_s9 = smov 256   ;;  %s1969_s18 = smov 16  }
 0x1be   : > { %1625 = dma.vmem_to_hbm [thread:$0]  (%p2081_p12), %s2414_s4, 4096, %s2412_s5, %s1402_s16, %s1968_s9, %s1968_s9, %s1969_s18  }
 0x1bf PF: > { %s1430_s20 = sand.u32 1, %s1945_s12   ;;  %p2479_p10 = scmp.ne.s32.totalorder %s2469_s19, 0 }
 0x1c0   : > { %p2480_p13 = scmp.ge.s32.totalorder %s1957_s15, 2  ;;  %s1431_s22 = scalar_lea.sflag [#allocation4], %s1430_s20 }
 0x1c2   : > { %p1636_p3 = pnand %p2480_p13, %p2479_p10 }
 0x1c4   : > { %1876 = dma.done.wait (!%p1636_p3), %s1431_s22, 4096  }
 0x1c5   : > { %1878 = vsyncadd (!%p1636_p3), %s1431_s22, 4294963200  ;;  %p17_p7 = scmp.ge.s32.totalorder %s2046_s24, 4   ;;  %s2481_s12 = smov %s1949_s13 }
 0x1c6   : > { %s2482_s13 = smov %s1953_s14  ;;  %s2483_s14 = smov %s2077_s17 }
 0x1c7   : > { %s2484_s15 = smov %s2046_s24  ;;  %19 = sbr.rel (!%p17_p7) target bundleno = 6 (0x6), region = 81 }
 0x1ce   :  { %1436 = vsyncpa [#allocation3], 1 }
 0x1cf   :  { %1438 = vsyncpa [#allocation3 + $0x1], 1 }
 0x1d0   :  { %1439 = vsyncpa [#allocation6], 1 }
 0x1d1   :  { %1440 = vsyncpa [#allocation4], 1 }
 0x1d2   :  { %1442 = vsyncpa [#allocation4 + $0x1], 1 }

</bundles_post_ra>
